<compile_context>
chip_gen: v6e
topology: v6e:2x2x1
jax: 0.10.0
libtpu: 0.0.40
codegen_flags: <defaults>
</compile_context>

<pallas_src>
import jax
import jax.numpy as jnp
from jax.experimental import pallas as pl
from jax.experimental.pallas import tpu as pltpu


def attention_kernel(c_ref, v_ref, wva_ref, o_ref):
    """One batch element (one timestep/image) per grid step.

    c_ref   : SMEM [B]     folded scalar  c = W_a(W_h(h))  per sample
    v_ref   : VMEM [N, F]  object features V_r for this sample
    wva_ref : VMEM [1, F]  folded weight row  W_a @ W_v   (shared)
    o_ref   : VMEM [N, F]
    """
    b = pl.program_id(0)
    V = v_ref[...]                                   # [N, F] f32
    wva = wva_ref[...]                               # [1, F]

    # Folded score: s[j] = W_a(W_v V[j] + W_h h) = V[j] . wva + c.
    # VPU multiply + XLU lane-reduce; no MXU, no FxF weight in VMEM.
    s = jnp.sum(V * wva, axis=-1, keepdims=True) + c_ref[b]      # [N, 1]

    # PyTorch broadcast => scores[i, j] = s[j], constant along the softmax
    # axis (dim 0):  softmax entry = exp(s[j]-s[j]) / N, and the subsequent
    # sum over dim 0 multiplies back by N.  Evaluate on the [N, 1] vector.
    n = jnp.float32(V.shape[0])
    attn_col = jnp.exp(s - s) / n        # softmax entries (exactly 1/N; NaN/inf propagate)
    w = attn_col * n                     # sum over the N identical broadcast rows
    o_ref[...] = (V * w).astype(o_ref.dtype)


def fold_attention_params(W_v, W_h, W_a):
    """One-time (init-time) fold of the score path -- do NOT call per forward.

    Returns the only weight data the kernel ever needs:
      wva_row [1, F] = W_a @ W_v,   wha_row [1, H] = W_a @ W_h.
    """
    wva_row = (W_a @ W_v).astype(jnp.float32)        # [1, F]
    wha_row = (W_a @ W_h).astype(jnp.float32)        # [1, H]
    return wva_row, wha_row


def attention_forward_batched(h2d, V_b, wva_row, wha_row):
    """h2d: [B, H], V_b: [B, N, F]  ->  [B, N, F]."""
    B, N, F = V_b.shape
    # Per-sample scalar c = W_a(W_h(h)): a 1xH dot in plain XLA, shipped via SMEM.
    c = jnp.sum(h2d.astype(jnp.float32) * wha_row, axis=-1)      # [B]
    wva = wva_row.reshape(1, F).astype(jnp.float32)

    return pl.pallas_call(
        attention_kernel,
        out_shape=jax.ShapeDtypeStruct((B, N, F), jnp.float32),
        grid=(B,),
        in_specs=[
            # Scalars live in SMEM (no (8,128)-padded VMEM tile for them).
            pl.BlockSpec(memory_space=pltpu.MemorySpace.SMEM),         # c  [B]
            # Batch dim squeezed out; (N, F) tiles are full-array in the last
            # two dims so any N, F are legal; default space is VMEM.
            pl.BlockSpec((None, N, F), lambda b: (b, 0, 0)),           # V_r
            pl.BlockSpec((1, F), lambda b: (0, 0)),                    # folded weight row
        ],
        out_specs=pl.BlockSpec((None, N, F), lambda b: (b, 0, 0)),
        compiler_params=pltpu.CompilerParams(
            # Batch axis is embarrassingly parallel: amortises per-call
            # overhead and shards across v7x's two TensorCores.
            dimension_semantics=("parallel",)),
    )(c, V_b.astype(jnp.float32), wva)


def attention_module_forward(h, V_r, wva_row, wha_row):
    """Single-sample forward matching AttentionModule.forward:
       h: [1, 1, H] (or [1, H] / [H]),  V_r: [N, F]  ->  [N, F]."""
    out = attention_forward_batched(h.reshape(1, -1), V_r[None, ...], wva_row, wha_row)
    return out[0]


def reference_forward(h, V_r, W_v, W_h, W_a):
    """Pure-JAX emulation of the exact PyTorch broadcasting semantics."""
    N = V_r.shape[0]
    Hrep = jnp.broadcast_to(h.reshape(1, 1, -1), (N, 1, h.shape[-1]))      # [N,1,H]
    wv = V_r @ W_v.T                                                        # [N,F]
    wh = Hrep @ W_h.T                                                       # [N,1,F]
    pre = wv[None, :, :] + wh                                               # [N,N,F]
    scores = pre @ W_a.T                                                    # [N,N,1]
    attn = jax.nn.softmax(scores, axis=0)                                   # [N,N,1]
    ctx = V_r[None, :, :] * attn                                            # [N,N,F]
    return ctx.sum(axis=0)                                                  # [N,F]


if __name__ == "__main__":
    num_objects = 8
    num_features = 128
    hidden_size = 32
    batch = 4          # several timesteps/images batched through one pallas_call

    key = jax.random.PRNGKey(0)
    k1, k2, k3, k4, k5 = jax.random.split(key, 5)

    # Deterministic synthetic parameters (PyTorch nn.Linear weight layouts).
    W_v = jax.random.normal(k1, (num_features, num_features), jnp.float32) * 0.05
    W_h = jax.random.normal(k2, (num_features, hidden_size), jnp.float32) * 0.05
    W_a = jax.random.normal(k3, (1, num_features), jnp.float32) * 0.05

    # Inputs: a small batch of (V_r, h) pairs.
    V_b = jax.random.normal(k4, (batch, num_objects, num_features), jnp.float32)
    h_b = jax.random.normal(k5, (batch, 1, 1, hidden_size), jnp.float32)

    # Fold weights ONCE, outside the hot path (no per-call transposes / DMAs).
    wva_row, wha_row = fold_attention_params(W_v, W_h, W_a)

    # Batched call: grid over batch, "parallel" semantics.
    out_b = attention_forward_batched(h_b.reshape(batch, -1), V_b, wva_row, wha_row)
    out_b = jax.block_until_ready(out_b)

    # Single-sample call matching the PyTorch module signature.
    out_1 = attention_module_forward(h_b[0], V_b[0], wva_row, wha_row)
    out_1 = jax.block_until_ready(out_1)

    # Validate against a pure-JAX emulation of the exact PyTorch semantics.
    assert out_b.shape == (batch, num_objects, num_features)
    assert out_1.shape == (num_objects, num_features)
    for b in range(batch):
        ref_b = reference_forward(h_b[b], V_b[b], W_v, W_h, W_a)
        assert jnp.allclose(out_b[b], ref_b, atol=1e-4, rtol=1e-4), f"mismatch at batch {b}"
    ref_0 = reference_forward(h_b[0], V_b[0], W_v, W_h, W_a)
    assert jnp.allclose(out_1, ref_0, atol=1e-4, rtol=1e-4), "single-sample mismatch"

    print("KERNEL_OK")
</pallas_src>

<mosaic_0001>
module attributes {stable_mosaic.version = 11 : i64} {
  func.func @attention_kernel(%arg0: i32, %arg1: memref<4xf32, #tpu.memory_space<smem>>, %arg2: memref<1x8x128xf32, #tpu.memory_space<vmem>>, %arg3: memref<1x128xf32, #tpu.memory_space<vmem>>, %arg4: memref<1x8x128xf32, #tpu.memory_space<vmem>>) attributes {dimension_semantics = [#tpu.dimension_semantics<parallel>], iteration_bounds = array<i64: 4>, scalar_prefetch = 0 : i64, scratch_operands = 0 : i64, tpu.core_type = #tpu.core_type<tc>, window_params = [{transform_indices = @transform_0, window_bounds = array<i64: 4>}, {transform_indices = @transform_1, window_bounds = array<i64: 1, 8, 128>}, {pipeline_mode = #tpu.pipeline_mode<synchronous>, transform_indices = @transform_2, window_bounds = array<i64: 1, 128>}, {transform_indices = @transform_3, window_bounds = array<i64: 1, 8, 128>}]} {
    %c0 = arith.constant 0 : index
    %c0_0 = arith.constant 0 : index
    %c0_1 = arith.constant 0 : index
    %0 = vector.load %arg2[%c0, %c0_0, %c0_1] : memref<1x8x128xf32, #tpu.memory_space<vmem>>, vector<1x8x128xf32>
    %1 = vector.shape_cast %0 : vector<1x8x128xf32> to vector<8x128xf32>
    %c0_2 = arith.constant 0 : index
    %c0_3 = arith.constant 0 : index
    %2 = vector.load %arg3[%c0_2, %c0_3] : memref<1x128xf32, #tpu.memory_space<vmem>>, vector<1x128xf32>
    %3 = vector.broadcast %2 : vector<1x128xf32> to vector<8x128xf32>
    %4 = arith.mulf %1, %3 : vector<8x128xf32>
    %cst = arith.constant dense<0.000000e+00> : vector<8xf32>
    %5 = vector.multi_reduction <add>, %4, %cst [1] : vector<8x128xf32> to vector<8xf32>
    %6 = vector.shape_cast %5 : vector<8xf32> to vector<8x1xf32>
    %7 = arith.index_cast %arg0 : i32 to index
    %8 = memref.load %arg1[%7] : memref<4xf32, #tpu.memory_space<smem>>
    %9 = vector.broadcast %8 : f32 to vector<8x1xf32>
    %10 = arith.addf %6, %9 : vector<8x1xf32>
    %11 = arith.subf %10, %10 : vector<8x1xf32>
    %12 = math.exp %11 : vector<8x1xf32>
    %cst_4 = arith.constant 8.000000e+00 : f32
    %13 = vector.broadcast %cst_4 : f32 to vector<8x1xf32>
    %14 = arith.divf %12, %13 : vector<8x1xf32>
    %cst_5 = arith.constant 8.000000e+00 : f32
    %15 = vector.broadcast %cst_5 : f32 to vector<8x1xf32>
    %16 = arith.mulf %14, %15 : vector<8x1xf32>
    %17 = vector.broadcast %16 : vector<8x1xf32> to vector<8x128xf32>
    %18 = arith.mulf %1, %17 : vector<8x128xf32>
    %c0_6 = arith.constant 0 : index
    %c0_7 = arith.constant 0 : index
    %c0_8 = arith.constant 0 : index
    %19 = vector.load %arg4[%c0_6, %c0_7, %c0_8] : memref<1x8x128xf32, #tpu.memory_space<vmem>>, vector<1x8x128xf32>
    %20 = vector.shape_cast %19 : vector<1x8x128xf32> to vector<8x128xf32>
    %21 = vector.shape_cast %18 : vector<8x128xf32> to vector<1x8x128xf32>
    tpu.vector_store %arg4[%c0_6, %c0_7, %c0_8], %21 {strides = array<i32>} : memref<1x8x128xf32, #tpu.memory_space<vmem>>, vector<1x8x128xf32>,
    return
  }
  func.func @transform_0(%arg0: i32) -> i32 {
    %c0_i32 = arith.constant 0 : i32
    %c0_i32_0 = arith.constant 0 : i32
    return %c0_i32 : i32
  }
  func.func @transform_1(%arg0: i32) -> (i32, i32, i32) {
    %c0_i32 = arith.constant 0 : i32
    %c0_i32_0 = arith.constant 0 : i32
    %c0_i32_1 = arith.constant 0 : i32
    return %arg0, %c0_i32, %c0_i32_0 : i32, i32, i32
  }
  func.func @transform_2(%arg0: i32) -> (i32, i32) {
    %c0_i32 = arith.constant 0 : i32
    %c0_i32_0 = arith.constant 0 : i32
    %c0_i32_1 = arith.constant 0 : i32
    return %c0_i32, %c0_i32_0 : i32, i32
  }
  func.func @transform_3(%arg0: i32) -> (i32, i32, i32) {
    %c0_i32 = arith.constant 0 : i32
    %c0_i32_0 = arith.constant 0 : i32
    %c0_i32_1 = arith.constant 0 : i32
    return %arg0, %c0_i32, %c0_i32_0 : i32, i32, i32
  }
}

</mosaic_0001>

<bundles_post_ra>
// kernel: tpu_custom_call.1
= control target key start
LH: loop header
LB: loop body
LE: loop exit
PB: predicated region body
PF: predicated region fallthrough
CT: control target
= control target key end

     0   :  { %8 = vsyncpa [#allocation5], 0  ;;  %s670_s0 = inlined_call_operand.hbm [shape: f32[4], index: 0, kind: input, shape index: {}]   ;;  %s671_s1 = inlined_call_operand.hbm [shape: f32[4,8,128], index: 1, kind: input, shape index: {}]   ;;  %s672_s2 = inlined_call_operand.vmem [shape: f32[1,128], index: 2, kind: input, shape index: {}]   ;;  %s673_s3 = inlined_call_operand.hbm [shape: f32[4,8,128], index: 3, kind: output, shape index: {}]  }
   0x1   :  { %9 = vsyncpa [#allocation3], 0 }
   0x2   :  { %11 = vsyncpa [#allocation3 + $0x1], 0 }
   0x3   :  { %12 = vsyncpa [#allocation4], 0 }
   0x4   :  { %14 = vsyncpa [#allocation4 + $0x1], 0  ;;  %s522_s12 = smov 0   ;;  %s524_s13 = smov 0  }
   0x5   :  { %s526_s14 = smov 0   ;;  %s528_s15 = smov 0  }
   0x6 LB: > { %s543_s16 = sadd.s32 4294967295, %s497_s15   ;;  %s316_s17 = sadd.s32 4294967294, %s497_s15   ;;  %s497_s15 = sphi %s528_s15, %s692_s15   ;;  %s493_s14 = sphi %s526_s14, %s691_s14   ;;  %s489_s13 = sphi %s524_s13, %s690_s13   ;;  %s485_s12 = sphi %s522_s12, %s689_s12  }
   0x7   : > { %p61_p0 = scmp.ne.s32.totalorder %s489_s13, %s485_s12  ;;  %p674_p1 = scmp.eq.s32.totalorder %s543_s16, 0 }
   0x8   : > { %p106_p2 = scmp.eq.s32.totalorder %s543_s16, 3  ;;  %p112_p3 = scmp.eq.s32.totalorder %s316_s17, 3 }
   0x9   : > { %p552_p4 = por %p674_p1, %p61_p0  ;;  %p317_p5 = scmp.ge.s32.totalorder %s497_s15, 1 }
   0xa   : > { %p557_p6 = por %p112_p3, %p61_p0  ;;  %p119_p7 = scmp.lt.s32.totalorder %s497_s15, 5 }
   0xb   : > { %s678_s18 = scalar_select %p552_p4, 1, 0 }
   0xc   : > { %s679_s19 = scalar_select %p557_p6, 1, 0 }
   0xd   : > { %p562_p8 = pnand %p317_p5, %p119_p7  ;;  %s567_s21 = sadd.s32 1, %s497_s15  }
   0xe   : > { %s45_s22 = ssub.s32 %s497_s15, %s567_s21  ;;  %s48_s23 = sadd.s32 1, %s493_s14 }
   0xf   : > { %s680_s20 = scalar_select %p562_p8, 1, 0 }
  0x10   : > { %p339_p9 = pneg %p562_p8  ;;  %p46_p11 = scmp.eq.s32.totalorder %s45_s22, 0 }
  0x11   : > { %p55_p12 = scmp.ne.s32.totalorder %s493_s14, %s489_s13  ;;  %p56_p13 = scmp.eq.s32.totalorder %s497_s15, 0 }
  0x12   : > { %p340_p10 = pnand %p339_p9, %p674_p1  ;;  %p352_p0 = scmp.lt.s32.totalorder %s497_s15, 4 }
  0x13   : > { %s499_s24 = smov [#allocation2]   ;;  %p57_p3 = por %p56_p13, %p55_p12 }
  0x14   : > { %342 = dma.hbm_to_smem (!%p340_p10), %s670_s0, 16, %s499_s24, [#allocation5]  }
  0x15   : > { %s584_s27 = scalar_select %p46_p11, %s493_s14, %s48_s23  }
  0x16   : > { %p588_p5 = por %p106_p2, %p55_p12  ;;  %s144_s29 = sand.u32 1, %s493_s14  }
  0x17   : > { %s321_s30 = sshll.u32 %s497_s15, 7  ;;  %s320_s4 = sshll.u32 %s144_s29, 3 }
  0x18   : > { %s681_s28 = scalar_select %p588_p5, 1, 0 }
  0x19   : > { %s597_s7 = scalar_lea.hbm %s671_s1, %s321_s30  ;;  %s148_s8 = scalar_lea.vmem [#allocation6], %s320_s4 }
  0x1a   : > { %s155_s9 = sshll.u32 %s148_s8, 4  ;;  %p599_p7 = pnand %p352_p0, %p57_p3  ;;  %s156_s9 = int_to_ptr.vmem [resolvable:$true] %s155_s9 }
  0x1b   : > { %s145_s11 = scalar_lea.sflag [#allocation3], %s144_s29  ;;  %s401_s17 = scalar_lea.hbm %s597_s7, 128 }
  0x1c   : > { %p402_p2 = scmp.ne.s32.totalorder %s597_s7, %s401_s17  ;;  %p403_p9 = pneg %p599_p7 }
  0x1d   : > { %s406_s24 = scalar_lea.hbm %s671_s1, 512  ;;  %p407_p12 = scmp.lt.s32.totalorder %s597_s7, %s671_s1 }
  0x1e   : > { %p404_p10 = pnand %p403_p9, %p402_p2  ;;  %p408_p13 = scmp.lt.s32.totalorder %s406_s24, %s401_s17 }
  0x20   : > { %p405_p11 = pneg %p404_p10  ;;  %p409_p0 = por %p408_p13, %p407_p12 }
  0x22   : > { %p410_p3 = pnand %p409_p0, %p405_p11 }
  0x24   : > { %413 = shalt.err (!%p410_p3)
}
  0x25   : > { %s414_s30 = scalar_lea.vmem %s156_s9, 128  ;;  %s500_s29 = smov [#allocation6]  }
  0x26   : > { %p415_p1 = scmp.ne.s32.totalorder %s156_s9, %s414_s30  ;;  %s419_s4 = sshll.u32 %s500_s29, 4  ;;  %s420_s4 = int_to_ptr.vmem [resolvable:$false] %s419_s4 }
  0x27   : > { %s421_s5 = scalar_lea.vmem %s420_s4, 256  ;;  %p422_p2 = scmp.lt.s32.totalorder %s156_s9, %s420_s4 }
  0x28   : > { %p417_p6 = pnand %p415_p1, %p403_p9  ;;  %p423_p10 = scmp.lt.s32.totalorder %s421_s5, %s414_s30 }
  0x2a   : > { %p418_p5 = pneg %p417_p6  ;;  %p424_p4 = por %p423_p10, %p422_p2 }
  0x2c   : > { %p425_p8 = pnand %p424_p4, %p418_p5 }
  0x2e   : > { %428 = shalt.err (!%p425_p8)
}
  0x2f   : > { %346 = dma.hbm_to_vmem [thread:$0]  (!%p599_p7), %s597_s7, 128, %s156_s9, %s145_s11  }
  0x30   : > { %p683_p11 = scmp.ne.s32.totalorder %s680_s20, 0 }
  0x31   : > { %p684_p12 = scmp.eq.s32.totalorder (!%p683_p11), %s543_s16, 0 }
  0x32   : > { %164 = sbr.rel (%p683_p11) target bundleno = 243 (0xf3), region = 32 }
  0x37   : > { %472 = dma.done.wait (%p684_p12), [#allocation5], 16   ;;  %p685_p1 = pmov %p684_p12 }
  0x38   : > { %s624_s6 = sand.u32 1, %s489_s13   ;;  %p686_p4 = scmp.ne.s32.totalorder %s678_s18, 0 }
  0x39   : > { %474 = vsyncadd (%p685_p1), [#allocation5], 4294967280  ;;  %s324_s8 = sshll.u32 %s624_s6, 3  ;;  %s171_s17 = scalar_lea.sflag [#allocation3], %s624_s6 }
  0x3a   : > { %s174_s10 = scalar_lea.vmem [#allocation6], %s324_s8 }
  0x3b   : > { %476 = dma.done.wait (%p686_p4), %s171_s17, 128  }
  0x3c   : > { %478 = vsyncadd (%p686_p4), %s171_s17, 4294967168 }
  0x3d   : > { %179 = sfence }
  0x3e   : > { %v198_v0 = vld [vmem:[%s174_s10] sm:$0xff]  ;;  %s209_s9 = sld [smem:[#allocation2 + %s543_s16]]  ;;  %s328_s18 = sshll.u32 %s543_s16, 7 }
  0x3f   : > { %v326_v1 = vld [vmem:[%s672_s2] ss:$0 sm:$0xff]  ;;  %s197_s11 = scalar_lea.vmem [#allocation7], %s324_s8  ;;  %s232_s25 = scalar_lea.hbm %s673_s3, %s328_s18 }
  0x40   : > { %v206_v2 = vmul.f32 %v326_v1, %v198_v0  ;;  %s234_s22 = sshll.u32 %s197_s11, 4  ;;  %s221_s26 = scalar_lea.sflag [#allocation4], %s624_s6  ;;  %s235_s22 = int_to_ptr.vmem [resolvable:$true] %s234_s22 }
  0x41   : > { %s429_s30 = scalar_lea.vmem %s235_s22, 128  ;;  %p687_p8 = scmp.ne.s32.totalorder %s681_s28, 0 }
  0x42   : > { %207 = vadd.xlane.f32.xlu0 %v206_v2  ;;  %p430_p6 = scmp.ne.s32.totalorder %s235_s22, %s429_s30  ;;  %s501_s29 = smov [#allocation7]  }
  0x43   : > { %s433_s4 = sshll.u32 %s501_s29, 4  ;;  %s434_s4 = int_to_ptr.vmem [resolvable:$false] %s433_s4 }
  0x44   : > { %v210_v3 = vstv %s209_s9  ;;  %p431_p5 = pnand %p430_p6, %p687_p8  ;;  %s435_s16 = scalar_lea.vmem %s434_s4, 256 }
  0x45   : > { %p436_p9 = scmp.lt.s32.totalorder %s235_s22, %s434_s4  ;;  %p437_p13 = scmp.lt.s32.totalorder %s435_s16, %s429_s30 }
  0x46   : > { %p432_p7 = pneg %p431_p5 }
  0x47   : > { %p438_p0 = por %p437_p13, %p436_p9 }
  0x49   : > { %p439_p3 = pnand %p438_p0, %p432_p7 }
  0xcb   : > { %v208_v4 = vpop.xlane.xlu0 %207 }
  0xcc   : > { %v211_v5 = vadd.f32 %v210_v3, %v208_v4 }
  0xce   : > { %v212_v6 = vsub.f32 %v211_v5, %v211_v5 }
  0xd0   : > { %v213_v7 = vmul.f32 1.442695, %v212_v6 }
  0xd2   : > { %388 = vpow2.f32 %v213_v7 }
  0xdf   : > { %v389_v8 = vpop.eup %388 }
  0xe0   : > { %v216_v9 = vmul.f32 0.125, %v389_v8 }
  0xe2   : > { %v217_v10 = vmul.f32 8.0, %v216_v9 }
  0xe4   : > { %v218_v11 = vmul.f32 %v217_v10, %v198_v0 }
  0xe6   : > { %219 = vst [vmem:[%s197_s11] sm:$0xff] %v218_v11 }
  0xe7   : > { %442 = shalt.err (!%p439_p3)
}
  0xe8   : > { %s443_s5 = scalar_lea.hbm %s232_s25, 128  ;;  %s447_s17 = scalar_lea.hbm %s673_s3, 512 }
  0xe9   : > { %p444_p2 = scmp.ne.s32.totalorder %s232_s25, %s443_s5  ;;  %p448_p12 = scmp.lt.s32.totalorder %s232_s25, %s673_s3 }
  0xea   : > { %p449_p1 = scmp.lt.s32.totalorder %s447_s17, %s443_s5 }
  0xeb   : > { %p445_p10 = pnand %p444_p2, %p687_p8 }
  0xec   : > { %p450_p4 = por %p449_p1, %p448_p12 }
  0xed   : > { %p446_p11 = pneg %p445_p10 }
  0xef   : > { %p451_p6 = pnand %p450_p4, %p446_p11 }
  0xf1   : > { %454 = shalt.err (!%p451_p6)
}
  0xf2   : > { %337 = dma.vmem_to_hbm [thread:$0]  (%p687_p8), %s235_s22, 128, %s232_s25, %s221_s26  }
  0xf3 PF: > { %p354_p5 = scmp.ge.s32.totalorder %s497_s15, 2  ;;  %s246_s7 = sand.u32 1, %s485_s12  }
  0xf4   : > { %p688_p7 = scmp.ne.s32.totalorder %s679_s19, 0  ;;  %s247_s9 = scalar_lea.sflag [#allocation4], %s246_s7 }
  0xf6   : > { %p348_p9 = pnand %p354_p5, %p688_p7 }
  0xf8   : > { %p349_p13 = pneg %p348_p9 }
  0xfa   : > { %480 = dma.done.wait (%p349_p13), %s247_s9, 128  }
  0xfb   : > { %482 = vsyncadd (%p349_p13), %s247_s9, 4294967168  ;;  %p17_p0 = scmp.ge.s32.totalorder %s567_s21, 6   ;;  %s689_s12 = smov %s489_s13 }
  0xfc   : > { %s690_s13 = smov %s493_s14  ;;  %s691_s14 = smov %s584_s27 }
  0xfd   : > { %s692_s15 = smov %s567_s21  ;;  %19 = sbr.rel (!%p17_p0) target bundleno = 6 (0x6), region = 82 }
 0x102   :  { %252 = vsyncpa [#allocation3], 1 }
 0x103   :  { %254 = vsyncpa [#allocation3 + $0x1], 1 }
 0x104   :  { %255 = vsyncpa [#allocation4], 1 }
 0x105   :  { %257 = vsyncpa [#allocation4 + $0x1], 1 }
 0x106   :  { %258 = vsyncpa [#allocation5], 1 }
 0x107   :  { %260 = vsyncpa [#allocation5 + $0x1], 1 }

</bundles_post_ra>
